<compile_context>
chip_gen: v7x
topology: tpu7x:2x2x1
jax: 0.10.0
libtpu: 0.0.40
codegen_flags: <defaults>
</compile_context>

<pallas_src>
import functools

import jax
import jax.numpy as jnp
from jax.experimental import pallas as pl
from jax.experimental.pallas import tpu as pltpu

_LANE = 128
_SUBLANE_BF16 = 16                 # bf16 packs 2 rows per sublane -> 16-row min tile
_DEFAULT_VMEM_LIMIT = 64 * 1024 * 1024


def _round_up(x, m):
    return (x + m - 1) // m * m


# --------------------------------- kernels ------------------------------------------------


def _attn_hidden_kernel(emb_ref, enc_ref, wq_ref, wc_ref, hid_ref, *, n_pix, batch, t_pad):
    """Cross-attention + tanh fusion for the whole batch (single block, runs once).

    emb_ref : (B*T_pad, H_pad)  bf16   token embeddings (flattened batch*time)
    enc_ref : (B, P_pad, E_pad) bf16   encoder features (identity encoder output)
    wq_ref  : (H_pad, E_pad)    bf16
    wc_ref  : (E_pad, H_pad)    bf16
    hid_ref : (B*T_pad, H_pad)  bf16   output hidden state
    """
    emb = emb_ref[...]                                                 # (BT, Hp)
    enc = enc_ref[...]                                                 # (B, Pp, Ep)

    # q = emb @ Wq   (f32 accumulation on the MXU)
    q2d = jnp.dot(emb, wq_ref[...], preferred_element_type=jnp.float32)
    q = q2d.reshape(batch, t_pad, -1).astype(jnp.bfloat16)            # (B, T, Ep)

    # scores = q @ enc^T : batched contraction over E (no materialized transpose)
    # TODO(synk): no 1/sqrt(E) scaling — the concrete decoder is unspecified (None) in the ref.
    scores = jnp.einsum('bte,bpe->btp', q, enc,
                        preferred_element_type=jnp.float32)           # (B, T, Pp)

    # mask zero-padded pixel columns, numerically-stable softmax (exact normalization)
    pix = jax.lax.broadcasted_iota(jnp.int32, scores.shape, 2)
    scores = jnp.where(pix < n_pix, scores, -1e30)
    scores = scores - jnp.max(scores, axis=-1, keepdims=True)
    p = jnp.exp(scores)
    attn = (p / jnp.sum(p, axis=-1, keepdims=True)).astype(jnp.bfloat16)

    # ctx = attn @ enc ;  hidden = tanh(emb + ctx @ Wc)
    ctx = jnp.einsum('btp,bpe->bte', attn, enc,
                     preferred_element_type=jnp.float32)              # (B, T, Ep)
    ctx2d = ctx.reshape(batch * t_pad, -1).astype(jnp.bfloat16)       # (BT, Ep)
    pre = jnp.dot(ctx2d, wc_ref[...], preferred_element_type=jnp.float32)
    hid_ref[...] = jnp.tanh(emb.astype(jnp.float32) + pre).astype(jnp.bfloat16)


def _vocab_proj_kernel(hid_ref, wout_ref, out_ref):
    """One lane-dense vocab tile of logits = hidden @ Wout[:, v*tv:(v+1)*tv]."""
    out_ref[...] = jnp.dot(hid_ref[...], wout_ref[...],
                           preferred_element_type=jnp.float32).astype(out_ref.dtype)


# ----------------------------- parameter preparation (one-time) ---------------------------


def prepare_params(params, *, tv=512):
    """Pad + cast decoder parameters once (hoisted out of the per-step hot path).

    params: dict with 'embedding' (V, H), 'wq' (H, E), 'wc' (E, H), 'wout' (H, V), all f32.
    tv: requested vocab tile width (lane-aligned and clamped to the vocab size).
    """
    V, H = params["embedding"].shape
    E = params["wq"].shape[1]

    H_pad = _round_up(H, _LANE)
    E_pad = _round_up(E, _LANE)
    tv = max(_LANE, _round_up(min(tv, V), _LANE))
    V_pad = _round_up(V, tv)

    emb_tbl = jnp.zeros((V, H_pad), jnp.bfloat16).at[:, :H].set(
        params["embedding"].astype(jnp.bfloat16))
    wq = jnp.zeros((H_pad, E_pad), jnp.bfloat16).at[:H, :E].set(
        params["wq"].astype(jnp.bfloat16))
    wc = jnp.zeros((E_pad, H_pad), jnp.bfloat16).at[:E, :H].set(
        params["wc"].astype(jnp.bfloat16))
    wout = jnp.zeros((H_pad, V_pad), jnp.bfloat16).at[:H, :V].set(
        params["wout"].astype(jnp.bfloat16))

    return dict(emb_tbl=emb_tbl, wq=wq, wc=wc, wout=wout,
                V=V, H=H, E=E, H_pad=H_pad, E_pad=E_pad, V_pad=V_pad, tv=tv)


# --------------------------------- forward ------------------------------------------------


def captioning_forward(images, encoded_captions, prepared, *,
                       logits_dtype=jnp.float32,
                       vmem_limit_bytes=_DEFAULT_VMEM_LIMIT):
    """Forward pass of CaptioningEncoderDecoderModel.

    images:           (B, P, E) float32  — encoder is None -> encoder_out = images (identity)
    encoded_captions: (B, T)    int32
    prepared:         output of prepare_params()
    returns logits:   (B, T, V) in `logits_dtype`
    """
    enc = images                                   # encoder_out = images (encoder is None)
    B, P, E = enc.shape
    T = encoded_captions.shape[1]
    assert E == prepared["E"]

    H_pad, E_pad, V_pad, tv = (prepared[k] for k in ("H_pad", "E_pad", "V_pad", "tv"))
    P_pad = _round_up(P, _LANE)
    T_pad = _round_up(T, _SUBLANE_BF16)            # 16-aligned (bf16 sublane packing)
    BT = B * T_pad
    nv = V_pad // tv

    # Token-embedding gather from the pre-cast, H-padded bf16 table (plain JAX).
    # TODO(synk): move the gather in-kernel via scalar-prefetched ids + pl.Element row index_map.
    emb = prepared["emb_tbl"][encoded_captions]                         # (B, T, H_pad) bf16
    emb2d = jnp.pad(emb, ((0, 0), (0, T_pad - T), (0, 0))).reshape(BT, H_pad)

    enc_p = jnp.zeros((B, P_pad, E_pad), jnp.bfloat16).at[:, :P, :E].set(
        enc.astype(jnp.bfloat16))

    # ---- pass 1: attention + hidden (single block, whole batch, runs once) ---------------
    hidden2d = pl.pallas_call(
        functools.partial(_attn_hidden_kernel, n_pix=P, batch=B, t_pad=T_pad),
        out_shape=jax.ShapeDtypeStruct((BT, H_pad), jnp.bfloat16),
        compiler_params=pltpu.CompilerParams(vmem_limit_bytes=vmem_limit_bytes),
    )(emb2d, enc_p, prepared["wq"], prepared["wc"])

    # ---- pass 2: vocab-tiled projection, 'parallel' grid (both TensorCores on v7x) -------
    def _project(single_buffer_resident):
        if single_buffer_resident:
            # constant-index resident input -> single buffer (frees VMEM for bigger tv)
            hid_spec = pl.BlockSpec((BT, H_pad), lambda v: (0, 0),
                                    pipeline_mode=pl.Buffered(1))
        else:
            hid_spec = pl.BlockSpec((BT, H_pad), lambda v: (0, 0))
        return pl.pallas_call(
            _vocab_proj_kernel,
            out_shape=jax.ShapeDtypeStruct((BT, V_pad), logits_dtype),
            grid=(nv,),
            in_specs=[
                hid_spec,
                pl.BlockSpec((H_pad, tv), lambda v: (0, v)),    # streamed Wout tile
            ],
            out_specs=pl.BlockSpec((BT, tv), lambda v: (0, v)),
            compiler_params=pltpu.CompilerParams(
                dimension_semantics=("parallel",),
                vmem_limit_bytes=vmem_limit_bytes,
            ),
        )(hidden2d, prepared["wout"])

    try:
        logits2d = _project(True)
    except Exception:
        # Fallback for JAX versions where pipeline_mode=pl.Buffered(1) is not supported on
        # the main pallas_call pipeline; semantics are identical (just 2x VMEM for `hidden`).
        logits2d = _project(False)

    return logits2d.reshape(B, T_pad, V_pad)[:, :T, :prepared["V"]]


# --------------------------------- reference & init ---------------------------------------


def _reference_forward(images, encoded_captions, params):
    """Pure-JAX f32 reference of the same decoder math."""
    emb = params["embedding"][encoded_captions]
    q = emb @ params["wq"]
    scores = jnp.einsum('bte,bpe->btp', q, images)
    attn = jax.nn.softmax(scores, axis=-1)
    ctx = jnp.einsum('btp,bpe->bte', attn, images)
    hidden = jnp.tanh(emb + ctx @ params["wc"])
    return hidden @ params["wout"]


def init_params(key, *, vocab=128, hidden=32, enc_dim=32):
    k0, k1, k2, k3 = jax.random.split(key, 4)
    scale = 0.02
    return {
        "embedding": scale * jax.random.normal(k0, (vocab, hidden), jnp.float32),
        "wq":        scale * jax.random.normal(k1, (hidden, enc_dim), jnp.float32),
        "wc":        scale * jax.random.normal(k2, (enc_dim, hidden), jnp.float32),
        "wout":      scale * jax.random.normal(k3, (hidden, vocab), jnp.float32),
    }


if __name__ == "__main__":
    key = jax.random.PRNGKey(0)
    k_img, k_cap, k_par = jax.random.split(key, 3)

    B, P, E = 2, 16, 32      # batch, num_pixels, encoder_dim
    T, H, V = 8, 32, 128     # seq len, hidden, vocab

    images = jax.random.normal(k_img, (B, P, E), jnp.float32)           # encoder features
    encoded_captions = jax.random.randint(k_cap, (B, T), 0, V, jnp.int32)
    params = init_params(k_par, vocab=V, hidden=H, enc_dim=E)

    # One-time parameter prep (padding + bf16 cast) — hoisted out of the hot path.
    prepared = prepare_params(params, tv=512)   # tv clamps to 128 for this tiny vocab

    logits = captioning_forward(images, encoded_captions, prepared)
    jax.block_until_ready(logits)

    assert logits.shape == (B, T, V)
    assert logits.dtype == jnp.float32

    # Tolerance check vs pure-JAX f32 reference (bf16 matmul operands -> loose tolerance).
    ref = _reference_forward(images, encoded_captions, params)
    assert jnp.allclose(logits, ref, rtol=5e-2, atol=1e-3), (
        float(jnp.max(jnp.abs(logits - ref))))

    print("KERNEL_OK")
</pallas_src>

<mosaic_0001>
module attributes {stable_mosaic.version = 11 : i64} {
  func.func @_attn_hidden_kernel(%arg0: memref<32x128xbf16, #tpu.memory_space<vmem>>, %arg1: memref<2x128x128xbf16, #tpu.memory_space<vmem>>, %arg2: memref<128x128xbf16, #tpu.memory_space<vmem>>, %arg3: memref<128x128xbf16, #tpu.memory_space<vmem>>, %arg4: memref<32x128xbf16, #tpu.memory_space<vmem>>) attributes {dimension_semantics = [], scalar_prefetch = 0 : i64, scratch_operands = 0 : i64, tpu.core_type = #tpu.core_type<tc>} {
    %c0 = arith.constant 0 : index
    %c0_0 = arith.constant 0 : index
    %0 = vector.load %arg0[%c0, %c0_0] : memref<32x128xbf16, #tpu.memory_space<vmem>>, vector<32x128xbf16>
    %c0_1 = arith.constant 0 : index
    %c0_2 = arith.constant 0 : index
    %c0_3 = arith.constant 0 : index
    %1 = vector.load %arg1[%c0_1, %c0_2, %c0_3] : memref<2x128x128xbf16, #tpu.memory_space<vmem>>, vector<2x128x128xbf16>
    %c0_4 = arith.constant 0 : index
    %c0_5 = arith.constant 0 : index
    %2 = vector.load %arg2[%c0_4, %c0_5] : memref<128x128xbf16, #tpu.memory_space<vmem>>, vector<128x128xbf16>
    %cst = arith.constant dense<0.000000e+00> : vector<32x128xf32>
    %3 = tpu.matmul %0, %2, %cst {dimension_numbers = #tpu.dot_dimension_numbers<[1], [0], [0], [1], [0, 0, 1, 1], [], []>} : vector<32x128xbf16>, vector<128x128xbf16>, vector<32x128xf32> -> vector<32x128xf32>
    %4 = vector.shape_cast %3 : vector<32x128xf32> to vector<2x16x128xf32>
    %5 = arith.truncf %4 : vector<2x16x128xf32> to vector<2x16x128xbf16>
    "tpu.trace_start"() <{level = 10 : i32, message = "bte,bpe->btp"}> : () -> ()
    %cst_6 = arith.constant dense<0.000000e+00> : vector<2x16x128xf32>
    %6 = tpu.matmul %5, %1, %cst_6 {dimension_numbers = #tpu.dot_dimension_numbers<[2], [2], [1], [1], [0, 0, 0, 1, 1, 1], [0], [0]>} : vector<2x16x128xbf16>, vector<2x128x128xbf16>, vector<2x16x128xf32> -> vector<2x16x128xf32>
    "tpu.trace_stop"() : () -> ()
    %7 = tpu.iota {dimensions = array<i32: 2>} : vector<2x16x128xi32>
    %c16_i32 = arith.constant 16 : i32
    %8 = vector.broadcast %c16_i32 : i32 to vector<2x16x128xi32>
    %9 = arith.cmpi slt, %7, %8 : vector<2x16x128xi32>
    %cst_7 = arith.constant -1.000000e+30 : f32
    %10 = vector.broadcast %cst_7 : f32 to vector<2x16x128xf32>
    %11 = arith.select %9, %6, %10 : vector<2x16x128xi1>, vector<2x16x128xf32>
    %cst_8 = arith.constant dense<0xFF800000> : vector<2x16xf32>
    %12 = vector.multi_reduction <maximumf>, %11, %cst_8 [2] : vector<2x16x128xf32> to vector<2x16xf32>
    %13 = vector.shape_cast %12 : vector<2x16xf32> to vector<2x16x1xf32>
    %14 = vector.broadcast %13 : vector<2x16x1xf32> to vector<2x16x128xf32>
    %15 = arith.subf %11, %14 : vector<2x16x128xf32>
    %16 = math.exp %15 : vector<2x16x128xf32>
    %cst_9 = arith.constant dense<0.000000e+00> : vector<2x16xf32>
    %17 = vector.multi_reduction <add>, %16, %cst_9 [2] : vector<2x16x128xf32> to vector<2x16xf32>
    %18 = vector.shape_cast %17 : vector<2x16xf32> to vector<2x16x1xf32>
    %19 = vector.broadcast %18 : vector<2x16x1xf32> to vector<2x16x128xf32>
    %20 = arith.divf %16, %19 : vector<2x16x128xf32>
    %21 = arith.truncf %20 : vector<2x16x128xf32> to vector<2x16x128xbf16>
    "tpu.trace_start"() <{level = 10 : i32, message = "btp,bpe->bte"}> : () -> ()
    %cst_10 = arith.constant dense<0.000000e+00> : vector<2x16x128xf32>
    %22 = tpu.matmul %21, %1, %cst_10 {dimension_numbers = #tpu.dot_dimension_numbers<[2], [1], [1], [2], [0, 0, 0, 1, 1, 2], [0], [0]>} : vector<2x16x128xbf16>, vector<2x128x128xbf16>, vector<2x16x128xf32> -> vector<2x16x128xf32>
    "tpu.trace_stop"() : () -> ()
    %23 = vector.shape_cast %22 : vector<2x16x128xf32> to vector<32x128xf32>
    %24 = arith.truncf %23 : vector<32x128xf32> to vector<32x128xbf16>
    %c0_11 = arith.constant 0 : index
    %c0_12 = arith.constant 0 : index
    %25 = vector.load %arg3[%c0_11, %c0_12] : memref<128x128xbf16, #tpu.memory_space<vmem>>, vector<128x128xbf16>
    %cst_13 = arith.constant dense<0.000000e+00> : vector<32x128xf32>
    %26 = tpu.matmul %24, %25, %cst_13 {dimension_numbers = #tpu.dot_dimension_numbers<[1], [0], [0], [1], [0, 0, 1, 1], [], []>} : vector<32x128xbf16>, vector<128x128xbf16>, vector<32x128xf32> -> vector<32x128xf32>
    %27 = arith.extf %0 : vector<32x128xbf16> to vector<32x128xf32>
    %28 = arith.addf %27, %26 : vector<32x128xf32>
    %29 = math.tanh %28 : vector<32x128xf32>
    %30 = arith.truncf %29 : vector<32x128xf32> to vector<32x128xbf16>
    %c0_14 = arith.constant 0 : index
    %c0_15 = arith.constant 0 : index
    %31 = vector.load %arg4[%c0_14, %c0_15] : memref<32x128xbf16, #tpu.memory_space<vmem>>, vector<32x128xbf16>
    tpu.vector_store %arg4[%c0_14, %c0_15], %30 {strides = array<i32>} : memref<32x128xbf16, #tpu.memory_space<vmem>>, vector<32x128xbf16>,
    return
  }
}

</mosaic_0001>

<bundles_post_ra>
// kernel: tpu_custom_call.1
= control target key start
LH: loop header
LB: loop body
LE: loop exit
PB: predicated region body
PF: predicated region fallthrough
CT: control target
= control target key end

     0   :  { %9 = vsyncpa [#allocation3], 0  ;;  %s1317_s0 = inlined_call_operand.hbm [shape: bf16[32,128], index: 0, kind: input, shape index: {}]   ;;  %s1318_s1 = inlined_call_operand.hbm [shape: bf16[2,128,128], index: 1, kind: input, shape index: {}]   ;;  %s1319_s2 = inlined_call_operand.hbm [shape: bf16[128,128], index: 2, kind: input, shape index: {}]   ;;  %s1320_s3 = inlined_call_operand.hbm [shape: bf16[128,128], index: 3, kind: input, shape index: {}]   ;;  %s1321_s4 = inlined_call_operand.hbm [shape: bf16[32,128], index: 4, kind: output, shape index: {}]  }
   0x1   :  { %10 = vsyncpa [#allocation6], 0 }
   0x2   :  { %11 = vsyncpa [#allocation9], 0 }
   0x3   :  { %12 = vsyncpa [#allocation4], 0  ;;  %s1124_s15 = smov [#allocation5]   ;;  %s1125_s17 = smov [#allocation2]  }
   0x4   :  { %s30_s16 = sshll.u32 %s1124_s15, 4  ;;  %s18_s18 = sshll.u32 %s1125_s17, 4  ;;  %s31_s16 = int_to_ptr.vmem [resolvable:$true] %s30_s16  ;;  %s1158_s18 = int_to_ptr.vmem [resolvable:$true] %s18_s18 }
   0x5   :  { %s1006_s21 = scalar_lea.hbm %s1318_s1, 2048 }
   0x6   :  { %p1007_p0 = scmp.ne.s32.totalorder %s1318_s1, %s1006_s21  ;;  %p1010_p1 = scmp.lt.u32.totalorder %s1006_s21, %s1318_s1 }
   0x8   :  { %p1012_p2 = pnand %p1010_p1, %p1007_p0 }
   0xa   :  { %1015 = shalt.err (!%p1012_p2)
}
   0xb   :  { %s1016_s26 = scalar_lea.vmem %s31_s16, 2048  ;;  %p1021_p4 = scmp.lt.s32.totalorder %s31_s16, %s31_s16 }
   0xc   :  { %p1017_p3 = scmp.ne.s32.totalorder %s31_s16, %s1016_s26  ;;  %p1022_p5 = scmp.lt.s32.totalorder %s1016_s26, %s1016_s26 }
   0xe   :  { %p1023_p6 = por %p1022_p5, %p1021_p4 }
  0x10   :  { %p1024_p7 = pnand %p1023_p6, %p1017_p3 }
  0x12   :  { %1027 = shalt.err (!%p1024_p7)
}
  0x13   :  { %s1126_s27 = smov 64   ;;  %s1127_s28 = smov 4  }
  0x14   :  { %36 = dma.hbm_to_vmem [thread:$0]  %s1318_s1, 2048, %s31_s16, [#allocation6], %s1126_s27, %s1126_s27, %s1127_s28  }
  0x15   :  { %s1028_s7 = scalar_lea.hbm %s1317_s0, 256 }
  0x16   :  { %p1029_p8 = scmp.ne.s32.totalorder %s1317_s0, %s1028_s7  ;;  %p1032_p9 = scmp.lt.u32.totalorder %s1028_s7, %s1317_s0 }
  0x18   :  { %p1034_p10 = pnand %p1032_p9, %p1029_p8 }
  0x1a   :  { %1037 = shalt.err (!%p1034_p10)
}
  0x1b   :  { %s1038_s12 = scalar_lea.vmem %s1158_s18, 256  ;;  %p1043_p12 = scmp.lt.s32.totalorder %s1158_s18, %s1158_s18 }
  0x1c   :  { %p1039_p11 = scmp.ne.s32.totalorder %s1158_s18, %s1038_s12  ;;  %p1044_p13 = scmp.lt.s32.totalorder %s1038_s12, %s1038_s12 }
  0x1e   :  { %p1045_p0 = por %p1044_p13, %p1043_p12 }
  0x20   :  { %p1046_p1 = pnand %p1045_p0, %p1039_p11 }
  0x22   :  { %1049 = shalt.err (!%p1046_p1)
}
  0x23   :  { %24 = dma.hbm_to_vmem [thread:$0]  %s1317_s0, 256, %s1158_s18, [#allocation3], %s1126_s27, %s1126_s27, %s1127_s28  }
  0x24   :  { %s1128_s14 = smov [#allocation7]   ;;  %s1129_s16 = smov [#allocation8]  }
  0x25   :  { %s42_s15 = sshll.u32 %s1128_s14, 4  ;;  %s54_s17 = sshll.u32 %s1129_s16, 4  ;;  %s43_s15 = int_to_ptr.vmem [resolvable:$true] %s42_s15  ;;  %s1195_s17 = int_to_ptr.vmem [resolvable:$true] %s54_s17 }
  0x26   :  { %s1050_s21 = scalar_lea.hbm %s1319_s2, 1024 }
  0x27   :  { %p1051_p2 = scmp.ne.s32.totalorder %s1319_s2, %s1050_s21  ;;  %p1054_p3 = scmp.lt.u32.totalorder %s1050_s21, %s1319_s2 }
  0x29   :  { %p1056_p4 = pnand %p1054_p3, %p1051_p2 }
  0x2b   :  { %1059 = shalt.err (!%p1056_p4)
}
  0x2c   :  { %s1060_s0 = scalar_lea.vmem %s43_s15, 1024  ;;  %p1065_p6 = scmp.lt.s32.totalorder %s43_s15, %s43_s15 }
  0x2d   :  { %p1061_p5 = scmp.ne.s32.totalorder %s43_s15, %s1060_s0  ;;  %p1066_p7 = scmp.lt.s32.totalorder %s1060_s0, %s1060_s0 }
  0x2f   :  { %p1067_p8 = por %p1066_p7, %p1065_p6 }
  0x31   :  { %p1068_p9 = pnand %p1067_p8, %p1061_p5 }
  0x33   :  { %1071 = shalt.err (!%p1068_p9)
}
  0x34   :  { %48 = dma.hbm_to_vmem [thread:$0]  %s1319_s2, 1024, %s43_s15, [#allocation6], %s1126_s27, %s1126_s27, %s1127_s28  }
  0x35   :  { %s1072_s5 = scalar_lea.hbm %s1320_s3, 1024 }
  0x36   :  { %p1073_p10 = scmp.ne.s32.totalorder %s1320_s3, %s1072_s5  ;;  %p1076_p11 = scmp.lt.u32.totalorder %s1072_s5, %s1320_s3 }
  0x38   :  { %p1078_p12 = pnand %p1076_p11, %p1073_p10 }
  0x3a   :  { %1081 = shalt.err (!%p1078_p12)
}
  0x3b   :  { %s1082_s10 = scalar_lea.vmem %s1195_s17, 1024  ;;  %p1087_p0 = scmp.lt.s32.totalorder %s1195_s17, %s1195_s17 }
  0x3c   :  { %p1083_p13 = scmp.ne.s32.totalorder %s1195_s17, %s1082_s10  ;;  %p1088_p1 = scmp.lt.s32.totalorder %s1082_s10, %s1082_s10 }
  0x3e   :  { %p1089_p2 = por %p1088_p1, %p1087_p0 }
  0x40   :  { %p1090_p3 = pnand %p1089_p2, %p1083_p13 }
  0x42   :  { %1093 = shalt.err (!%p1090_p3)
}
  0x43   :  { %60 = dma.hbm_to_vmem [thread:$0]  %s1320_s3, 1024, %s1195_s17, [#allocation9], %s1126_s27, %s1126_s27, %s1127_s28  }
  0x44   :  { %1116 = dma.done.wait [#allocation3], 256  }
  0x45   :  { %1117 = vsyncadd [#allocation3], 4294967040 }
  0x46   :  { %1118 = dma.done.wait [#allocation6], 3072  }
  0x47   :  { %1119 = vsyncadd [#allocation6], 4294964224 }
  0x48   :  { %1120 = dma.done.wait [#allocation9], 1024  }
  0x49   :  { %1121 = vsyncadd [#allocation9], 4294966272  ;;  %v1130_v0 = vmov 0.0   ;;  %v946_v1 = vld [vmem:[#allocation7] sm:$0xff]   ;;  %v947_v2 = vld [vmem:[#allocation7 + $0x8] sm:$0xff]   ;;  %vm1131_vm0 = vmmov 0   ;;  %v415_v33 = vlaneseq }
  0x4a   :  { %837 = vmatprep.subr.bf16.mxu1 %v1130_v0  ;;  %817 = vmatprep.subr.bf16.mxu0 %v946_v1  ;;  %v948_v3 = vld [vmem:[#allocation7 + $0x10] sm:$0xff]   ;;  %v949_v4 = vld [vmem:[#allocation7 + $0x18] sm:$0xff]   ;;  %v1235_v6 = vld [vmem:[#allocation5] sm:$0xff]   ;;  %s1132_s3 = smov [#allocation10]  }
  0x4b   :  { %818 = vmatpush3.bf16.msra.mxu0 %v946_v1  ;;  %v1233_v5 = vld [vmem:[#allocation2] sm:$0xff]   ;;  %v950_v7 = vld [vmem:[#allocation7 + $0x20] sm:$0xff]   ;;  %838 = vmatpush3.bf16.xpose.msra.mxu1 %v1235_v6  ;;  %v951_v8 = vld [vmem:[#allocation7 + $0x28] sm:$0xff]   ;;  %v416_v34 = vand.u32 127, %v415_v33  ;;  %s694_s12 = sshll.u32 %s1132_s3, 4  ;;  %s695_s12 = int_to_ptr.vmem [resolvable:$true] %s694_s12 }
  0x4c   :  { %819 = vmatprep.subr.bf16.mxu0 %v947_v2  ;;  %833 = vmatprep.mubr.bf16.mxu0 %v1233_v5  ;;  %v1240_v9 = vld [vmem:[#allocation5 + $0x8] sm:$0xff]   ;;  %v952_v10 = vld [vmem:[#allocation7 + $0x30] sm:$0xff]   ;;  %v953_v11 = vld [vmem:[#allocation7 + $0x38] sm:$0xff]   ;;  %s1094_s1 = scalar_lea.vmem %s695_s12, 256  ;;  %p1099_p5 = scmp.lt.s32.totalorder %s695_s12, %s695_s12 }
  0x4d   :  { %839 = vmatprep.subr.bf16.mxu1 %v1130_v0  ;;  %v1244_v12 = vld [vmem:[#allocation5 + $0x10] sm:$0xff]   ;;  %v1246_v13 = vld [vmem:[#allocation2 + $0x8] sm:$0xff]   ;;  %v956_v15 = vld [vmem:[#allocation5 + $0x40] sm:$0xff]   ;;  %853 = vmatprep.mubr.msk.bf16.mxu1 %vm1131_vm0, %v1130_v0  ;;  %vm417_vm1 = vcmp.lt.s32.totalorder %v416_v34, 16  ;;  %v657_v34 = vunpack.c.l.bf16 %v1233_v5  ;;  %p1095_p4 = scmp.ne.s32.totalorder %s695_s12, %s1094_s1  ;;  %p1100_p6 = scmp.lt.s32.totalorder %s1094_s1, %s1094_s1 }
  0x4e   :  { %v1251_v14 = vld [vmem:[#allocation5 + $0x18] sm:$0xff]   ;;  %v1256_v16 = vld [vmem:[#allocation5 + $0x20] sm:$0xff]   ;;  %v958_v17 = vld [vmem:[#allocation5 + $0x48] sm:$0xff]   ;;  %v659_v33 = vunpack.c.l.bf16 %v1246_v13 }
  0x4f   :  { %820 = vmatpush3.bf16.msra.mxu0 %v947_v2  ;;  %v967_v18 = vld [vmem:[#allocation5 + $0x28] sm:$0xff]   ;;  %v960_v19 = vld [vmem:[#allocation5 + $0x50] sm:$0xff]   ;;  %v962_v21 = vld [vmem:[#allocation5 + $0x58] sm:$0xff]   ;;  %p1101_p7 = por %p1100_p6, %p1099_p5 }
  0x50   :  { %821 = vmatprep.subr.bf16.mxu0 %v948_v3  ;;  %v969_v20 = vld [vmem:[#allocation5 + $0x30] sm:$0xff]   ;;  %v971_v22 = vld [vmem:[#allocation5 + $0x38] sm:$0xff]   ;;  %v964_v23 = vld [vmem:[#allocation5 + $0x60] sm:$0xff]  }
  0x51   :  { %v966_v24 = vld [vmem:[#allocation5 + $0x68] sm:$0xff]   ;;  %v968_v25 = vld [vmem:[#allocation5 + $0x70] sm:$0xff]   ;;  %v970_v26 = vld [vmem:[#allocation5 + $0x78] sm:$0xff]   ;;  %p1102_p8 = pnand %p1101_p7, %p1095_p4 }
  0x52   :  { %v972_v63 = vld [vmem:[#allocation8] sm:$0xff]  }
  0x53   :  { %822 = vmatpush3.bf16.msra.mxu0 %v948_v3  ;;  %840 = vmatpush3.bf16.xpose.msra.mxu1 %v1240_v9 }
  0x54   :  { %823 = vmatprep.subr.bf16.mxu0 %v949_v4  ;;  %841 = vmatprep.subr.bf16.mxu1 %v1130_v0 }
  0x57   :  { %824 = vmatpush3.bf16.msra.mxu0 %v949_v4 }
  0x58   :  { %825 = vmatprep.subr.bf16.mxu0 %v950_v7 }
  0x5b   :  { %826 = vmatpush3.bf16.msra.mxu0 %v950_v7  ;;  %842 = vmatpush3.bf16.xpose.msra.mxu1 %v1244_v12 }
  0x5c   :  { %827 = vmatprep.subr.bf16.mxu0 %v951_v8  ;;  %843 = vmatprep.subr.bf16.mxu1 %v1130_v0 }
  0x5f   :  { %828 = vmatpush3.bf16.msra.mxu0 %v951_v8 }
  0x60   :  { %829 = vmatprep.subr.bf16.mxu0 %v952_v10 }
  0x63   :  { %830 = vmatpush3.bf16.msra.mxu0 %v952_v10  ;;  %844 = vmatpush3.bf16.xpose.msra.mxu1 %v1251_v14 }
  0x64   :  { %831 = vmatprep.subr.bf16.mxu0 %v953_v11  ;;  %845 = vmatprep.subr.bf16.mxu1 %v1130_v0 }
  0x67   :  { %832 = vmatpush3.bf16.msra.mxu0 %v953_v11  ;;  %v973_v11 = vld [vmem:[#allocation8 + $0x8] sm:$0xff]  }
  0x68   :  { %857 = vmatprep.subr.bf16.mxu0 %v1130_v0 }
  0x6a   :  { %834 = vmatmul.mubr.bf16.vlgmr.msra.gmra.mrb[0].mxu0 %v1246_v13 }
  0x6b   :  { %846 = vmatpush3.bf16.xpose.msra.mxu1 %v1256_v16  ;;  %873 = vmatprep.mubr.msk.bf16.mxu0 %vm1131_vm0, %v1130_v0 }
  0x6c   :  { %847 = vmatprep.subr.bf16.mxu1 %v1130_v0 }
  0x70   :  { %858 = vmatpush3.bf16.xpose.msra.mxu0 %v956_v15 }
  0x71   :  { %859 = vmatprep.subr.bf16.mxu0 %v1130_v0 }
  0x73   :  { %848 = vmatpush3.bf16.xpose.msra.mxu1 %v967_v18 }
  0x74   :  { %849 = vmatprep.subr.bf16.mxu1 %v1130_v0 }
  0x78   :  { %860 = vmatpush3.bf16.xpose.msra.mxu0 %v958_v17 }
  0x79   :  { %861 = vmatprep.subr.bf16.mxu0 %v1130_v0 }
  0x7b   :  { %850 = vmatpush3.bf16.xpose.msra.mxu1 %v969_v20 }
  0x7c   :  { %851 = vmatprep.subr.bf16.mxu1 %v1130_v0 }
  0x80   :  { %862 = vmatpush3.bf16.xpose.msra.mxu0 %v960_v19 }
  0x81   :  { %863 = vmatprep.subr.bf16.mxu0 %v1130_v0 }
  0x83   :  { %852 = vmatpush3.bf16.xpose.msra.mxu1 %v971_v22 }
  0x84   :  { %877 = vmatprep.subr.bf16.mxu1 %v1130_v0 }
  0x88   :  { %864 = vmatpush3.bf16.xpose.msra.mxu0 %v962_v21 }
  0x89   :  { %865 = vmatprep.subr.bf16.mxu0 %v1130_v0 }
  0x90   :  { %866 = vmatpush3.bf16.xpose.msra.mxu0 %v964_v23 }
  0x91   :  { %867 = vmatprep.subr.bf16.mxu0 %v1130_v0 }
  0x98   :  { %868 = vmatpush3.bf16.xpose.msra.mxu0 %v966_v24 }
  0x99   :  { %869 = vmatprep.subr.bf16.mxu0 %v1130_v0 }
  0xa0   :  { %870 = vmatpush3.bf16.xpose.msra.mxu0 %v968_v25 }
  0xa1   :  { %871 = vmatprep.subr.bf16.mxu0 %v1130_v0 }
  0xa8   :  { %872 = vmatpush3.bf16.xpose.msra.mxu0 %v970_v26 }
  0xa9   :  { %897 = vmatprep.subr.bf16.mxu0 %v1130_v0 }
 0x13d   :  { %v835_v27 = vpop.f32.mrb[0].mxu0 }
 0x13e   :  { %v220_v28 = vpop.f32.mrb[1].mxu0 }
 0x13f   :  { %v836_v29 = vpop.f32.mrb[2].mxu0 }
 0x140   :  { %v236_v30 = vpack.c.bf16 %v836_v29, %v835_v27  ;;  %v223_v31 = vpop.f32.mrb[3].mxu0 }
 0x141   :  { %v235_v32 = vpack.c.bf16 %v223_v31, %v220_v28 }
 0x142   :  { %874 = vmatmul.mubr.bf16.vlgmr.msra.gmra.mrb[4].mxu0 %v236_v30 }
 0x143   :  { %854 = vmatmul.mubr.bf16.vlgmr.msra.gmra.mrb[0].mxu1 %v235_v32  ;;  %898 = vmatpush3.bf16.msra.mxu0 %v956_v15 }
 0x144   :  { %878 = vmatpush3.bf16.msra.mxu1 %v1235_v6  ;;  %899 = vmatprep.subr.bf16.mxu0 %v1130_v0 }
 0x145   :  { %879 = vmatprep.subr.bf16.mxu1 %v1130_v0  ;;  %893 = vmatprep.mubr.msk.bf16.mxu1 %vm1131_vm0, %v1130_v0 }
 0x146   :  { %913 = vmatprep.mubr.msk.bf16.mxu0 %vm1131_vm0, %v1130_v0 }
 0x147   :  { %900 = vmatpush3.bf16.msra.mxu0 %v958_v17  ;;  %v974_v17 = vld [vmem:[#allocation8 + $0x10] sm:$0xff]  }
 0x148   :  { %880 = vmatpush3.bf16.msra.mxu1 %v1240_v9  ;;  %901 = vmatprep.subr.bf16.mxu0 %v1130_v0 }
 0x149   :  { %881 = vmatprep.subr.bf16.mxu1 %v1130_v0 }
 0x14b   :  { %902 = vmatpush3.bf16.msra.mxu0 %v960_v19  ;;  %v976_v19 = vld [vmem:[#allocation8 + $0x20] sm:$0xff]  }
 0x14c   :  { %882 = vmatpush3.bf16.msra.mxu1 %v1244_v12  ;;  %903 = vmatprep.subr.bf16.mxu0 %v1130_v0 }
 0x14d   :  { %883 = vmatprep.subr.bf16.mxu1 %v1130_v0 }
 0x14f   :  { %904 = vmatpush3.bf16.msra.mxu0 %v962_v21  ;;  %v978_v21 = vld [vmem:[#allocation8 + $0x30] sm:$0xff]  }
 0x150   :  { %884 = vmatpush3.bf16.msra.mxu1 %v1251_v14  ;;  %905 = vmatprep.subr.bf16.mxu0 %v1130_v0 }
 0x151   :  { %885 = vmatprep.subr.bf16.mxu1 %v1130_v0 }
 0x153   :  { %906 = vmatpush3.bf16.msra.mxu0 %v964_v23 }
 0x154   :  { %886 = vmatpush3.bf16.msra.mxu1 %v1256_v16  ;;  %907 = vmatprep.subr.bf16.mxu0 %v1130_v0 }
 0x155   :  { %887 = vmatprep.subr.bf16.mxu1 %v1130_v0 }
 0x157   :  { %908 = vmatpush3.bf16.msra.mxu0 %v966_v24 }
 0x158   :  { %888 = vmatpush3.bf16.msra.mxu1 %v967_v18  ;;  %909 = vmatprep.subr.bf16.mxu0 %v1130_v0  ;;  %v975_v18 = vld [vmem:[#allocation8 + $0x18] sm:$0xff]  }
 0x159   :  { %889 = vmatprep.subr.bf16.mxu1 %v1130_v0 }
 0x15b   :  { %910 = vmatpush3.bf16.msra.mxu0 %v968_v25 }
 0x15c   :  { %890 = vmatpush3.bf16.msra.mxu1 %v969_v20  ;;  %911 = vmatprep.subr.bf16.mxu0 %v1130_v0  ;;  %v977_v20 = vld [vmem:[#allocation8 + $0x28] sm:$0xff]  }
 0x15d   :  { %891 = vmatprep.subr.bf16.mxu1 %v1130_v0 }
 0x15f   :  { %912 = vmatpush3.bf16.msra.mxu0 %v970_v26 }
 0x160   :  { %892 = vmatpush3.bf16.msra.mxu1 %v971_v22  ;;  %v979_v22 = vld [vmem:[#allocation8 + $0x38] sm:$0xff]  }
 0x161   :  { %917 = vmatprep.subr.bf16.mxu1 %v972_v63 }
 0x215   :  { %v408_v35 = vpop.f32.mrb[4].mxu0 }
 0x216   :  { %v319_v36 = vpop.f32.mrb[0].mxu1  ;;  %v875_v37 = vpop.f32.mrb[5].mxu0  ;;  %v420_v38 = vsel %vm417_vm1, %v408_v35, -1e+30  ;;  %v660_v35 = vunpack.c.h.bf16 %v1246_v13 }
 0x217   :  { %426 = vmax.xlane.f32.xlu1 %v420_v38  ;;  %v855_v39 = vpop.f32.mrb[1].mxu1  ;;  %v411_v40 = vpop.f32.mrb[6].mxu0  ;;  %v418_v41 = vsel %vm417_vm1, %v319_v36, -1e+30  ;;  %v658_v36 = vunpack.c.h.bf16 %v1233_v5 }
 0x218   :  { %v876_v42 = vpop.f32.mrb[7].mxu0  ;;  %422 = vmax.xlane.f32.xlu0 %v418_v41  ;;  %v322_v43 = vpop.f32.mrb[2].mxu1  ;;  %v421_v45 = vsel %vm417_vm1, %v411_v40, -1e+30 }
 0x219   :  { %v856_v44 = vpop.f32.mrb[3].mxu1  ;;  %v419_v46 = vsel %vm417_vm1, %v322_v43, -1e+30 }
 0x21b   :  { %428 = vmax.xlane.f32.xlu1 %v421_v45 }
 0x21c   :  { %424 = vmax.xlane.f32.xlu0 %v419_v46 }
 0x2a4   :  { %v427_v47 = vpop.xlane.xlu1 %426 }
 0x2a5   :  { %v432_v48 = vsub.f32 %v420_v38, %v427_v47  ;;  %v423_v49 = vpop.xlane.xlu0 %422 }
 0x2a6   :  { %v430_v50 = vsub.f32 %v418_v41, %v423_v49 }
 0x2a7   :  { %v438_v53 = vmul.f32 1.442695, %v432_v48 }
 0x2a8   :  { %v434_v51 = vmul.f32 1.442695, %v430_v50  ;;  %v429_v52 = vpop.xlane.xlu1 %428 }
 0x2a9   :  { %v425_v54 = vpop.xlane.xlu0 %424  ;;  %v433_v55 = vsub.f32 %v421_v45, %v429_v52 }
 0x2aa   :  { %982 = vpow2.f32 %v434_v51  ;;  %v431_v56 = vsub.f32 %v419_v46, %v425_v54 }
 0x2ab   :  { %984 = vpow2.f32 %v438_v53  ;;  %v440_v58 = vmul.f32 1.442695, %v433_v55 }
 0x2ac   :  { %v436_v57 = vmul.f32 1.442695, %v431_v56 }
 0x2ae   :  { %986 = vpow2.f32 %v436_v57 }
 0x2af   :  { %988 = vpow2.f32 %v440_v58 }
 0x2b4   :  { %v983_v59 = vpop.eup %982 }
 0x2b5   :  { %442 = vadd.xlane.f32.xlu0 %v983_v59  ;;  %v985_v60 = vpop.eup %984 }
 0x2b8   :  { %v987_v61 = vpop.eup %986 }
 0x2b9   :  { %446 = vadd.xlane.f32.xlu0 %v985_v60  ;;  %444 = vadd.xlane.f32.xlu1 %v987_v61  ;;  %v989_v62 = vpop.eup %988 }
 0x2bd   :  { %448 = vadd.xlane.f32.xlu1 %v989_v62 }
 0x342   :  { %v443_v0 = vpop.xlane.xlu0 %442 }
 0x343   :  { %990 = vrcp.f32 %v443_v0 }
 0x346   :  { %v445_v1 = vpop.xlane.xlu1 %444  ;;  %v447_v2 = vpop.xlane.xlu0 %446 }
 0x347   :  { %992 = vrcp.f32 %v445_v1 }
 0x348   :  { %994 = vrcp.f32 %v447_v2 }
 0x34a   :  { %v449_v3 = vpop.xlane.xlu1 %448 }
 0x34b   :  { %996 = vrcp.f32 %v449_v3 }
 0x34d   :  { %v991_v4 = vpop.eup %990 }
 0x34e   :  { %v451_v7 = vmul.f32 %v991_v4, %v983_v59 }
 0x351   :  { %v993_v6 = vpop.eup %992 }
 0x352   :  { %v453_v8 = vmul.f32 %v993_v6, %v987_v61  ;;  %v995_v9 = vpop.eup %994 }
 0x353   :  { %v455_v14 = vmul.f32 %v995_v9, %v985_v60 }
 0x354   :  { %v458_v10 = vpack.c.bf16 %v453_v8, %v451_v7 }
 0x355   :  { %v997_v12 = vpop.eup %996 }
 0x356   :  { %894 = vmatmul.mubr.bf16.vlgmr.msra.gmra.mrb[4].mxu1 %v458_v10  ;;  %v457_v15 = vmul.f32 %v997_v12, %v989_v62 }
 0x357   :  { %918 = vmatpush3.bf16.msra.mxu1 %v972_v63 }
 0x358   :  { %v459_v16 = vpack.c.bf16 %v457_v15, %v455_v14  ;;  %919 = vmatprep.subr.bf16.mxu1 %v973_v11 }
 0x35a   :  { %914 = vmatmul.mubr.bf16.vlgmr.msra.gmra.mrb[8].mxu0 %v459_v16 }
 0x35b   :  { %920 = vmatpush3.bf16.msra.mxu1 %v973_v11 }
 0x35c   :  { %921 = vmatprep.subr.bf16.mxu1 %v974_v17 }
 0x35f   :  { %922 = vmatpush3.bf16.msra.mxu1 %v974_v17 }
 0x360   :  { %923 = vmatprep.subr.bf16.mxu1 %v975_v18 }
 0x363   :  { %924 = vmatpush3.bf16.msra.mxu1 %v975_v18 }
 0x364   :  { %925 = vmatprep.subr.bf16.mxu1 %v976_v19 }
 0x367   :  { %926 = vmatpush3.bf16.msra.mxu1 %v976_v19 }
 0x368   :  { %927 = vmatprep.subr.bf16.mxu1 %v977_v20 }
 0x36b   :  { %928 = vmatpush3.bf16.msra.mxu1 %v977_v20 }
 0x36c   :  { %929 = vmatprep.subr.bf16.mxu1 %v978_v21 }
 0x36f   :  { %930 = vmatpush3.bf16.msra.mxu1 %v978_v21 }
 0x370   :  { %931 = vmatprep.subr.bf16.mxu1 %v979_v22 }
 0x373   :  { %932 = vmatpush3.bf16.msra.mxu1 %v979_v22 }
 0x429   :  { %v494_v23 = vpop.f32.mrb[4].mxu1 }
 0x42a   :  { %v895_v24 = vpop.f32.mrb[5].mxu1 }
 0x42b   :  { %v497_v25 = vpop.f32.mrb[6].mxu1 }
 0x42c   :  { %v542_v26 = vpack.c.bf16 %v497_v25, %v494_v23  ;;  %v896_v27 = vpop.f32.mrb[7].mxu1 }
 0x42d   :  { %v535_v28 = vpop.f32.mrb[8].mxu0 }
 0x42e   :  { %v915_v29 = vpop.f32.mrb[9].mxu0  ;;  %933 = vmatprep.mubr.bf16.mxu1 %v542_v26 }
 0x42f   :  { %v538_v30 = vpop.f32.mrb[10].mxu0 }
 0x430   :  { %v543_v31 = vpack.c.bf16 %v538_v30, %v535_v28  ;;  %v916_v32 = vpop.f32.mrb[11].mxu0 }
 0x432   :  { %934 = vmatmul.mubr.bf16.vlgmr.msra.gmra.mrb[8].mxu1 %v543_v31 }
 0x505   :  { %v935_v37 = vpop.f32.mrb[8].mxu1 }
 0x506   :  { %v663_v38 = vadd.f32 %v935_v37, %v659_v33  ;;  %v642_v39 = vpop.f32.mrb[9].mxu1 }
 0x507   :  { %v661_v40 = vadd.f32 %v657_v34, %v642_v39  ;;  %v936_v41 = vpop.f32.mrb[10].mxu1 }
 0x508   :  { %998 = vtanh.f32 %v663_v38  ;;  %v664_v42 = vadd.f32 %v936_v41, %v660_v35  ;;  %v645_v43 = vpop.f32.mrb[11].mxu1 }
 0x509   :  { %1000 = vtanh.f32 %v661_v40  ;;  %v662_v44 = vadd.f32 %v658_v36, %v645_v43 }
 0x50a   :  { %1002 = vtanh.f32 %v664_v42 }
 0x50b   :  { %1004 = vtanh.f32 %v662_v44 }
 0x512   :  { %v999_v45 = vpop.eup %998 }
 0x513   :  { %v1001_v46 = vpop.eup %1000 }
 0x514   :  { %v1003_v47 = vpop.eup %1002 }
 0x515   :  { %v1005_v13 = vpop.eup %1004  ;;  %v758_v48 = vpack.c.bf16 %v1003_v47, %v999_v45 }
 0x516   :  { %v753_v5 = vpack.c.bf16 %v1005_v13, %v1001_v46 }
 0x517   :  { %760 = vst [vmem:[#allocation10 + $0x8] sm:$0xff] %v758_v48  }
 0x518   :  { %754 = vst [vmem:[#allocation10] sm:$0xff] %v753_v5  }
 0x519   :  { %1105 = shalt.err (!%p1102_p8)
}
 0x51a   :  { %s1106_s15 = scalar_lea.hbm %s1321_s4, 256 }
 0x51b   :  { %p1107_p9 = scmp.ne.s32.totalorder %s1321_s4, %s1106_s15  ;;  %p1110_p10 = scmp.lt.u32.totalorder %s1106_s15, %s1321_s4 }
 0x51d   :  { %p1112_p11 = pnand %p1110_p10, %p1107_p9 }
 0x51f   :  { %1115 = shalt.err (!%p1112_p11)
}
 0x520   :  { %700 = dma.vmem_to_hbm [thread:$0]  %s695_s12, 256, %s1321_s4, [#allocation4], %s1126_s27, %s1126_s27, %s1127_s28  }
 0x521   :  { %1122 = dma.done.wait [#allocation4], 256  }
 0x522   :  { %1123 = vsyncadd [#allocation4], 4294967040 }
 0x523   :  { %704 = vsyncpa [#allocation3], 1 }
 0x524   :  { %705 = vsyncpa [#allocation6], 1 }
 0x525   :  { %706 = vsyncpa [#allocation9], 1 }
 0x526   :  { %707 = vsyncpa [#allocation4], 1 }

</bundles_post_ra>
